<compile_context>
chip_gen: v7x
topology: tpu7x:2x2x1
jax: 0.10.0
libtpu: 0.0.40
codegen_flags: <defaults>
</compile_context>

<pallas_src>
import jax
import jax.numpy as jnp
import numpy as np
from jax.experimental import pallas as pl
from jax.experimental.pallas import tpu as pltpu

# ----------------------------- configuration -----------------------------
N = 2            # batch
H = W = 16       # spatial
C = 3            # channels (fixed by the Normalize stats in the module)
KH = KW = 3      # synthetic encoder conv kernel
HO, WO = H - KH + 1, W - KW + 1
P = HO * WO                      # valid-conv positions = 196
KB = KH * KW * C                 # per-branch im2col width = 27
KCOMB = 2 * KB                   # combined (rgb|res per tap) width = 54
F_RGB = 32       # rgb_encoder.num_features (synthetic)
F_RES = 32       # res_encoder.num_features (synthetic)
F_SUM = F_RGB + F_RES
HIDDEN = 512     # decoder Linear width (as in the module)
NUM_CLASSES = 4
HEAD_PAD = 8     # packed head output: cols 0..3 type, col 4 flag, rest zero
BN_EPS = 1e-5

RGB_MEAN = np.array([0.3914976, 0.44266784, 0.46043398], np.float32) * 255.0
RGB_STD = np.array([0.17819773, 0.17319807, 0.18128773], np.float32) * 255.0
RES_MEAN = np.array([0.85, -0.51, 0.69], np.float32)
RES_STD = np.array([0.68, 0.47, 0.6], np.float32)


# ------------------------------- glue ops --------------------------------
def im2col_nhwc(x):
    """(N, H, W, Ch) -> (N, P, 9*Ch); (dh, dw) outer / channel inner order."""
    n, _, _, ch = x.shape
    cols = []
    for dh in range(KH):
        for dw in range(KW):
            cols.append(x[:, dh:dh + HO, dw:dw + WO, :].reshape(n, P, ch))
    return jnp.concatenate(cols, axis=-1)


def replicate_stats(v3):
    """Per-channel (3,) stat -> (1, 27) matching the per-branch im2col order."""
    return jnp.tile(jnp.asarray(v3, jnp.float32), KH * KW)[None, :]


def _full_spec(shape):
    return pl.BlockSpec(shape, lambda i: (0,) * len(shape))


# -------------------- one-time parameter preparation ----------------------
def prepare_params(p):
    """Fold / pack everything ONCE. Run outside the jitted forward."""
    def fold_norm(mean_k, invstd_k, w, b):
        w_eff = w * invstd_k.T                    # (KB, F)
        b_eff = b - (mean_k * invstd_k) @ w       # (1, F)
        return w_eff, b_eff

    w_rgb, b_rgb = fold_norm(p["rgb_mean"], p["rgb_invstd"], p["rgb_w"], p["rgb_b"])
    w_res, b_res = fold_norm(p["res_mean"], p["res_invstd"], p["res_w"], p["res_b"])

    # Block-diagonal encoder weight matching the channel-concatenated im2col
    # column order (tap-major; within a tap: 3 rgb channels then 3 res channels).
    w_enc = jnp.zeros((KH * KW, 2 * C, F_SUM), jnp.float32)
    w_enc = w_enc.at[:, :C, :F_RGB].set(w_rgb.reshape(KH * KW, C, F_RGB))
    w_enc = w_enc.at[:, C:, F_RGB:].set(w_res.reshape(KH * KW, C, F_RES))
    w_enc = w_enc.reshape(KCOMB, F_SUM)                       # (54, 64)
    b_enc = jnp.concatenate([b_rgb, b_res], axis=1)           # (1, 64)

    # Fold eval-mode BatchNorm1d into the decoder Linear.
    scale = p["bn_gamma"] * jax.lax.rsqrt(p["bn_var"] + BN_EPS)    # (1, HIDDEN)
    w1 = p["w1"] * scale                                           # (64, 512)
    b1 = (p["b1"] - p["bn_mean"]) * scale + p["bn_beta"]           # (1, 512)

    # Merge type/flag classifiers into one small (HIDDEN, 8) head weight.
    wh = jnp.zeros((HIDDEN, HEAD_PAD), jnp.float32)
    wh = wh.at[:, :NUM_CLASSES].set(p["wt"])
    wh = wh.at[:, NUM_CLASSES:NUM_CLASSES + 1].set(p["wf"])
    bh = jnp.zeros((1, HEAD_PAD), jnp.float32)
    bh = bh.at[:, :NUM_CLASSES].set(p["bt"])
    bh = bh.at[:, NUM_CLASSES:NUM_CLASSES + 1].set(p["bf"])

    # GlobalAvgPool2d as a block-diagonal averaging matmul (MXU, not XLU).
    avg = jnp.kron(jnp.eye(N, dtype=jnp.float32),
                   jnp.full((1, P), 1.0 / P, jnp.float32))     # (N, N*P)

    return {"w_enc": w_enc, "b_enc": b_enc, "w1": w1, "b1": b1,
            "wh": wh, "bh": bh, "avg": avg}


# --------------------------- fused model kernel ----------------------------
def _fused_kernel(pat_ref, avg_ref, we_ref, be_ref,
                  w1_ref, b1_ref, wh_ref, bh_ref, out_ref):
    # pat: (N*P, 54)   avg: (N, N*P)   we: (54, 64)   be: (1, 64)
    # w1 : (64, 512)   b1 : (1, 512)   wh: (512, 8)   bh: (1, 8)
    # out: (N, 8)

    # Both encoder branches at once (Normalize folded into we/be) + ReLU.
    act = jnp.maximum(
        jnp.dot(pat_ref[...], we_ref[...],
                preferred_element_type=jnp.float32) + be_ref[...], 0.0)

    # GlobalAvgPool2d for both branches as one averaging matmul -> (N, 64).
    feat = jnp.dot(avg_ref[...], act, preferred_element_type=jnp.float32)

    # Decoder Linear (concat is already the lane layout of `feat`) + folded
    # eval-mode BatchNorm1d + ReLU.
    h = jnp.maximum(
        jnp.dot(feat, w1_ref[...], preferred_element_type=jnp.float32)
        + b1_ref[...], 0.0)

    # Dropout(p=0) is identity. Merged type|flag classifier head.
    out_ref[...] = (jnp.dot(h, wh_ref[...], preferred_element_type=jnp.float32)
                    + bh_ref[...])


def fused_forward(patches, avg, w_enc, b_enc, w1, b1, wh, bh):
    args = (patches, avg, w_enc, b_enc, w1, b1, wh, bh)
    return pl.pallas_call(
        _fused_kernel,
        out_shape=jax.ShapeDtypeStruct((N, HEAD_PAD), jnp.float32),
        grid=(1,),
        in_specs=[_full_spec(a.shape) for a in args],
        out_specs=_full_spec((N, HEAD_PAD)),
        compiler_params=pltpu.CompilerParams(
            dimension_semantics=("arbitrary",)),
    )(*args)


# ------------------------------ full model --------------------------------
@jax.jit
def siamese_forward(image_nchw, residual_nchw, folded):
    # NCHW (PyTorch) -> NHWC, channel-concat both inputs, then im2col (glue).
    img = jnp.transpose(image_nchw, (0, 2, 3, 1)).astype(jnp.float32)
    res = jnp.transpose(residual_nchw, (0, 2, 3, 1)).astype(jnp.float32)
    x = jnp.concatenate([img, res], axis=-1)                 # (N, H, W, 2C)
    patches = im2col_nhwc(x).reshape(N * P, KCOMB)           # (392, 54)

    out = fused_forward(patches, folded["avg"], folded["w_enc"], folded["b_enc"],
                        folded["w1"], folded["b1"], folded["wh"], folded["bh"])
    type_logits = out[:, :NUM_CLASSES]
    flag_logit = out[:, NUM_CLASSES:NUM_CLASSES + 1]
    return {"pred_modification_flag": flag_logit,
            "pred_modification_type": type_logits}


# --------------------------- pure-JAX reference ----------------------------
def reference_forward(image_nchw, residual_nchw, p):
    def enc(x_nchw, mean_k, invstd_k, w, b):
        x = jnp.transpose(x_nchw, (0, 2, 3, 1)).astype(jnp.float32)
        pat = (im2col_nhwc(x) - mean_k) * invstd_k
        fm = jnp.maximum(jnp.einsum("npk,kf->npf", pat, w) + b, 0.0)
        return fm.mean(axis=1)

    rgb = enc(image_nchw, p["rgb_mean"], p["rgb_invstd"], p["rgb_w"], p["rgb_b"])
    res = enc(residual_nchw, p["res_mean"], p["res_invstd"], p["res_w"], p["res_b"])
    x = jnp.concatenate([rgb, res], axis=1)
    h = x @ p["w1"] + p["b1"]
    h = (h - p["bn_mean"]) * jax.lax.rsqrt(p["bn_var"] + BN_EPS) * p["bn_gamma"] + p["bn_beta"]
    h = jnp.maximum(h, 0.0)
    return {"pred_modification_flag": h @ p["wf"] + p["bf"],
            "pred_modification_type": h @ p["wt"] + p["bt"]}


# --------------------------------- main ------------------------------------
if __name__ == "__main__":
    key = jax.random.PRNGKey(0)
    keys = jax.random.split(key, 10)

    # Deterministic synthetic parameters (no checkpoint load).
    params = {
        "rgb_mean": replicate_stats(RGB_MEAN),
        "rgb_invstd": replicate_stats(1.0 / RGB_STD),
        "res_mean": replicate_stats(RES_MEAN),
        "res_invstd": replicate_stats(1.0 / RES_STD),
        "rgb_w": 0.1 * jax.random.normal(keys[0], (KB, F_RGB), jnp.float32),
        "rgb_b": 0.1 * jax.random.normal(keys[1], (1, F_RGB), jnp.float32),
        "res_w": 0.1 * jax.random.normal(keys[2], (KB, F_RES), jnp.float32),
        "res_b": 0.1 * jax.random.normal(keys[3], (1, F_RES), jnp.float32),
        "w1": 0.05 * jax.random.normal(keys[4], (F_SUM, HIDDEN), jnp.float32),
        "b1": 0.05 * jax.random.normal(keys[5], (1, HIDDEN), jnp.float32),
        # BatchNorm1d defaults (weight=1, bias=0, running_mean=0, running_var=1).
        "bn_gamma": jnp.ones((1, HIDDEN), jnp.float32),
        "bn_beta": jnp.zeros((1, HIDDEN), jnp.float32),
        "bn_mean": jnp.zeros((1, HIDDEN), jnp.float32),
        "bn_var": jnp.ones((1, HIDDEN), jnp.float32),
        "wt": 0.05 * jax.random.normal(keys[6], (HIDDEN, NUM_CLASSES), jnp.float32),
        "bt": 0.05 * jax.random.normal(keys[7], (1, NUM_CLASSES), jnp.float32),
        "wf": 0.05 * jax.random.normal(keys[8], (HIDDEN, 1), jnp.float32),
        "bf": 0.05 * jax.random.normal(keys[9], (1, 1), jnp.float32),
    }

    # One-time folding / packing (hoisted out of the per-call forward).
    folded = prepare_params(params)
    folded = jax.tree_util.tree_map(jax.block_until_ready, folded)

    # Inputs follow the PyTorch NCHW convention.
    kin = jax.random.split(jax.random.PRNGKey(42), 2)
    image = jax.random.uniform(kin[0], (N, C, H, W), jnp.float32, 0.0, 255.0)
    residual = jax.random.normal(kin[1], (N, C, H, W), jnp.float32)

    out = siamese_forward(image, residual, folded)
    jax.block_until_ready(out)

    ref = reference_forward(image, residual, params)
    np.testing.assert_allclose(np.asarray(out["pred_modification_type"]),
                               np.asarray(ref["pred_modification_type"]),
                               rtol=1e-4, atol=1e-4)
    np.testing.assert_allclose(np.asarray(out["pred_modification_flag"]),
                               np.asarray(ref["pred_modification_flag"]),
                               rtol=1e-4, atol=1e-4)

    # TODO(synk): BatchNorm1d is folded in eval mode (running stats); training-
    # mode batch statistics / stat updates and Dropout(p>0) are not reproduced.
    print("KERNEL_OK")
</pallas_src>

<mosaic_0001>
module attributes {stable_mosaic.version = 11 : i64} {
  func.func @_fused_kernel(%arg0: i32, %arg1: memref<392x54xf32, #tpu.memory_space<vmem>>, %arg2: memref<2x392xf32, #tpu.memory_space<vmem>>, %arg3: memref<54x64xf32, #tpu.memory_space<vmem>>, %arg4: memref<1x64xf32, #tpu.memory_space<vmem>>, %arg5: memref<64x512xf32, #tpu.memory_space<vmem>>, %arg6: memref<1x512xf32, #tpu.memory_space<vmem>>, %arg7: memref<512x8xf32, #tpu.memory_space<vmem>>, %arg8: memref<1x8xf32, #tpu.memory_space<vmem>>, %arg9: memref<2x8xf32, #tpu.memory_space<vmem>>) attributes {dimension_semantics = [#tpu.dimension_semantics<arbitrary>], iteration_bounds = array<i64: 1>, scalar_prefetch = 0 : i64, scratch_operands = 0 : i64, tpu.core_type = #tpu.core_type<tc>, window_params = [{pipeline_mode = #tpu.pipeline_mode<synchronous>, transform_indices = @transform_0, window_bounds = array<i64: 392, 54>}, {pipeline_mode = #tpu.pipeline_mode<synchronous>, transform_indices = @transform_1, window_bounds = array<i64: 2, 392>}, {pipeline_mode = #tpu.pipeline_mode<synchronous>, transform_indices = @transform_2, window_bounds = array<i64: 54, 64>}, {pipeline_mode = #tpu.pipeline_mode<synchronous>, transform_indices = @transform_3, window_bounds = array<i64: 1, 64>}, {pipeline_mode = #tpu.pipeline_mode<synchronous>, transform_indices = @transform_4, window_bounds = array<i64: 64, 512>}, {pipeline_mode = #tpu.pipeline_mode<synchronous>, transform_indices = @transform_5, window_bounds = array<i64: 1, 512>}, {pipeline_mode = #tpu.pipeline_mode<synchronous>, transform_indices = @transform_6, window_bounds = array<i64: 512, 8>}, {pipeline_mode = #tpu.pipeline_mode<synchronous>, transform_indices = @transform_7, window_bounds = array<i64: 1, 8>}, {pipeline_mode = #tpu.pipeline_mode<synchronous>, transform_indices = @transform_8, window_bounds = array<i64: 2, 8>}]} {
    %c0 = arith.constant 0 : index
    %c0_0 = arith.constant 0 : index
    %0 = vector.load %arg1[%c0, %c0_0] : memref<392x54xf32, #tpu.memory_space<vmem>>, vector<392x54xf32>
    %c0_1 = arith.constant 0 : index
    %c0_2 = arith.constant 0 : index
    %1 = vector.load %arg3[%c0_1, %c0_2] : memref<54x64xf32, #tpu.memory_space<vmem>>, vector<54x64xf32>
    %cst = arith.constant dense<0.000000e+00> : vector<392x64xf32>
    %2 = tpu.matmul %0, %1, %cst {dimension_numbers = #tpu.dot_dimension_numbers<[1], [0], [0], [1], [0, 0, 1, 1], [], []>} : vector<392x54xf32>, vector<54x64xf32>, vector<392x64xf32> -> vector<392x64xf32>
    %c0_3 = arith.constant 0 : index
    %c0_4 = arith.constant 0 : index
    %3 = vector.load %arg4[%c0_3, %c0_4] : memref<1x64xf32, #tpu.memory_space<vmem>>, vector<1x64xf32>
    %4 = vector.broadcast %3 : vector<1x64xf32> to vector<392x64xf32>
    %5 = arith.addf %2, %4 : vector<392x64xf32>
    %cst_5 = arith.constant 0.000000e+00 : f32
    %6 = vector.broadcast %cst_5 : f32 to vector<392x64xf32>
    %7 = arith.maximumf %5, %6 : vector<392x64xf32>
    %c0_6 = arith.constant 0 : index
    %c0_7 = arith.constant 0 : index
    %8 = vector.load %arg2[%c0_6, %c0_7] : memref<2x392xf32, #tpu.memory_space<vmem>>, vector<2x392xf32>
    %cst_8 = arith.constant dense<0.000000e+00> : vector<2x64xf32>
    %9 = tpu.matmul %8, %7, %cst_8 {dimension_numbers = #tpu.dot_dimension_numbers<[1], [0], [0], [1], [0, 0, 1, 1], [], []>} : vector<2x392xf32>, vector<392x64xf32>, vector<2x64xf32> -> vector<2x64xf32>
    %c0_9 = arith.constant 0 : index
    %c0_10 = arith.constant 0 : index
    %10 = vector.load %arg5[%c0_9, %c0_10] : memref<64x512xf32, #tpu.memory_space<vmem>>, vector<64x512xf32>
    %cst_11 = arith.constant dense<0.000000e+00> : vector<2x512xf32>
    %11 = tpu.matmul %9, %10, %cst_11 {dimension_numbers = #tpu.dot_dimension_numbers<[1], [0], [0], [1], [0, 0, 1, 1], [], []>} : vector<2x64xf32>, vector<64x512xf32>, vector<2x512xf32> -> vector<2x512xf32>
    %c0_12 = arith.constant 0 : index
    %c0_13 = arith.constant 0 : index
    %12 = vector.load %arg6[%c0_12, %c0_13] : memref<1x512xf32, #tpu.memory_space<vmem>>, vector<1x512xf32>
    %13 = vector.broadcast %12 : vector<1x512xf32> to vector<2x512xf32>
    %14 = arith.addf %11, %13 : vector<2x512xf32>
    %cst_14 = arith.constant 0.000000e+00 : f32
    %15 = vector.broadcast %cst_14 : f32 to vector<2x512xf32>
    %16 = arith.maximumf %14, %15 : vector<2x512xf32>
    %c0_15 = arith.constant 0 : index
    %c0_16 = arith.constant 0 : index
    %17 = vector.load %arg7[%c0_15, %c0_16] : memref<512x8xf32, #tpu.memory_space<vmem>>, vector<512x8xf32>
    %cst_17 = arith.constant dense<0.000000e+00> : vector<2x8xf32>
    %18 = tpu.matmul %16, %17, %cst_17 {dimension_numbers = #tpu.dot_dimension_numbers<[1], [0], [0], [1], [0, 0, 1, 1], [], []>} : vector<2x512xf32>, vector<512x8xf32>, vector<2x8xf32> -> vector<2x8xf32>
    %c0_18 = arith.constant 0 : index
    %c0_19 = arith.constant 0 : index
    %19 = vector.load %arg8[%c0_18, %c0_19] : memref<1x8xf32, #tpu.memory_space<vmem>>, vector<1x8xf32>
    %20 = vector.broadcast %19 : vector<1x8xf32> to vector<2x8xf32>
    %21 = arith.addf %18, %20 : vector<2x8xf32>
    %c0_20 = arith.constant 0 : index
    %c0_21 = arith.constant 0 : index
    %22 = vector.load %arg9[%c0_20, %c0_21] : memref<2x8xf32, #tpu.memory_space<vmem>>, vector<2x8xf32>
    tpu.vector_store %arg9[%c0_20, %c0_21], %21 {strides = array<i32>} : memref<2x8xf32, #tpu.memory_space<vmem>>, vector<2x8xf32>,
    return
  }
  func.func @transform_0(%arg0: i32) -> (i32, i32) {
    %c0_i32 = arith.constant 0 : i32
    %c0_i32_0 = arith.constant 0 : i32
    %c0_i32_1 = arith.constant 0 : i32
    return %c0_i32, %c0_i32_0 : i32, i32
  }
  func.func @transform_1(%arg0: i32) -> (i32, i32) {
    %c0_i32 = arith.constant 0 : i32
    %c0_i32_0 = arith.constant 0 : i32
    %c0_i32_1 = arith.constant 0 : i32
    return %c0_i32, %c0_i32_0 : i32, i32
  }
  func.func @transform_2(%arg0: i32) -> (i32, i32) {
    %c0_i32 = arith.constant 0 : i32
    %c0_i32_0 = arith.constant 0 : i32
    %c0_i32_1 = arith.constant 0 : i32
    return %c0_i32, %c0_i32_0 : i32, i32
  }
  func.func @transform_3(%arg0: i32) -> (i32, i32) {
    %c0_i32 = arith.constant 0 : i32
    %c0_i32_0 = arith.constant 0 : i32
    %c0_i32_1 = arith.constant 0 : i32
    return %c0_i32, %c0_i32_0 : i32, i32
  }
  func.func @transform_4(%arg0: i32) -> (i32, i32) {
    %c0_i32 = arith.constant 0 : i32
    %c0_i32_0 = arith.constant 0 : i32
    %c0_i32_1 = arith.constant 0 : i32
    return %c0_i32, %c0_i32_0 : i32, i32
  }
  func.func @transform_5(%arg0: i32) -> (i32, i32) {
    %c0_i32 = arith.constant 0 : i32
    %c0_i32_0 = arith.constant 0 : i32
    %c0_i32_1 = arith.constant 0 : i32
    return %c0_i32, %c0_i32_0 : i32, i32
  }
  func.func @transform_6(%arg0: i32) -> (i32, i32) {
    %c0_i32 = arith.constant 0 : i32
    %c0_i32_0 = arith.constant 0 : i32
    %c0_i32_1 = arith.constant 0 : i32
    return %c0_i32, %c0_i32_0 : i32, i32
  }
  func.func @transform_7(%arg0: i32) -> (i32, i32) {
    %c0_i32 = arith.constant 0 : i32
    %c0_i32_0 = arith.constant 0 : i32
    %c0_i32_1 = arith.constant 0 : i32
    return %c0_i32, %c0_i32_0 : i32, i32
  }
  func.func @transform_8(%arg0: i32) -> (i32, i32) {
    %c0_i32 = arith.constant 0 : i32
    %c0_i32_0 = arith.constant 0 : i32
    %c0_i32_1 = arith.constant 0 : i32
    return %c0_i32, %c0_i32_0 : i32, i32
  }
}

</mosaic_0001>

<bundles_post_ra>
// kernel: siamese_forward.1
= control target key start
LH: loop header
LB: loop body
LE: loop exit
PB: predicated region body
PF: predicated region fallthrough
CT: control target
= control target key end

     0   :  { %v1732_v0 = vmov 0.0|0.0   ;;  %vm1733_vm0 = vmmov 0   ;;  %v1734_v4 = vmov 0.0   ;;  %vm240_vm1 = vcmask 1045504   ;;  %s2514_s2 = inlined_call_operand.vmem [shape: f32[54,64], index: 2, kind: input, shape index: {}]   ;;  %s2515_s0 = inlined_call_operand.vmem [shape: f32[392,54], index: 0, kind: input, shape index: {}]   ;;  %s2516_s3 = inlined_call_operand.vmem [shape: f32[1,64], index: 3, kind: input, shape index: {}]   ;;  %s2517_s1 = inlined_call_operand.vmem [shape: f32[2,392], index: 1, kind: input, shape index: {}]   ;;  %s2518_s4 = inlined_call_operand.vmem [shape: f32[64,512], index: 4, kind: input, shape index: {}]   ;;  %s2519_s6 = inlined_call_operand.vmem [shape: f32[512,8], index: 6, kind: input, shape index: {}]   ;;  %s2520_s5 = inlined_call_operand.vmem [shape: f32[1,512], index: 5, kind: input, shape index: {}]   ;;  %s2521_s7 = inlined_call_operand.vmem [shape: f32[1,8], index: 7, kind: input, shape index: {}]   ;;  %s2522_s8 = inlined_call_operand.vmem [shape: f32[2,8], index: 8, kind: output, shape index: {}]  }
   0x1   :  { %1566 = vmatprep.subr.bf16.mxu0 %v1732_v0  ;;  %v78_v1 = vld [vmem:[%s2514_s2] sm:$0xff]  ;;  %v79_v2 = vld [vmem:[%s2514_s2 + $0x8] sm:$0xff]  ;;  %v80_v3 = vld [vmem:[%s2514_s2 + $0x10] sm:$0xff]  ;;  %1419 = vmatprep.mubr.msk.f32.mxu0 %vm1733_vm0, %v1734_v4  ;;  %vm92_vm2 = vcmask 441344   ;;  %v1735_v63 = vmov 1983009808  }
   0x2   :  { %v1567_v5 = vpack.c.bf16 %v79_v2, %v78_v1  ;;  %v81_v6 = vld [vmem:[%s2514_s2 + $0x18] sm:$0xff]  ;;  %v82_v8 = vld [vmem:[%s2514_s2 + $0x20] sm:$0xff]  ;;  %v83_v9 = vld [vmem:[%s2514_s2 + $0x28] sm:$0xff]  ;;  %v607_v1 = vunpack.c.l.s4 %v1735_v63  ;;  %v609_v2 = vlaneseq  ;;  %vm625_vm3 = vcmask 64512  }
   0x3   :  { %v1570_v7 = vpack.c.bf16 %v81_v6, %v80_v3  ;;  %v1573_v10 = vpack.c.bf16 %v83_v9, %v82_v8  ;;  %v84_v11 = vld [vmem:[%s2514_s2 + $0x30] sm:$0x3f]  ;;  %v29_v12 = vld [vmem:[%s2515_s0] sm:$0xff]  ;;  %v30_v13 = vld [vmem:[%s2515_s0 + $0x8] sm:$0xff]  ;;  %vm822_vm4 = vcmask 523264   ;;  %vm1183_vm5 = vcmask 58368  }
   0x4   :  { %1568 = vmatpush3.bf16.msra.mxu0 %v1567_v5  ;;  %v31_v14 = vld [vmem:[%s2515_s0 + $0x10] sm:$0xff]  ;;  %v32_v15 = vld [vmem:[%s2515_s0 + $0x18] sm:$0xff]  ;;  %v33_v16 = vld [vmem:[%s2515_s0 + $0x20] sm:$0xff]  ;;  %v608_v5 = vunpack.c.0.s8 %v607_v1  ;;  %v2105_v6 = vshrl.u32 %v609_v2, 7 }
   0x5   :  { %1569 = vmatprep.subr.bf16.mxu0 %v1732_v0  ;;  %v34_v17 = vld [vmem:[%s2515_s0 + $0x28] sm:$0xff]  ;;  %v35_v18 = vld [vmem:[%s2515_s0 + $0x30] sm:$0xff]  ;;  %v36_v19 = vld [vmem:[%s2515_s0 + $0x38] sm:$0xff] }
   0x6   :  { %v37_v20 = vld [vmem:[%s2515_s0 + $0x40] sm:$0xff]  ;;  %v38_v21 = vld [vmem:[%s2515_s0 + $0x48] sm:$0xff]  ;;  %v39_v22 = vld [vmem:[%s2515_s0 + $0x50] sm:$0xff]  ;;  %v611_v9 = vsub.s32 %v608_v5, %v2105_v6 }
   0x7   :  { %v40_v23 = vld [vmem:[%s2515_s0 + $0x58] sm:$0xff]  ;;  %v41_v24 = vld [vmem:[%s2515_s0 + $0x60] sm:$0xff]  ;;  %v42_v25 = vld [vmem:[%s2515_s0 + $0x68] sm:$0xff] }
   0x8   :  { %1571 = vmatpush3.bf16.msra.mxu0 %v1570_v7  ;;  %v43_v26 = vld [vmem:[%s2515_s0 + $0x70] sm:$0xff]  ;;  %v44_v27 = vld [vmem:[%s2515_s0 + $0x78] sm:$0xff]  ;;  %v45_v28 = vld [vmem:[%s2515_s0 + $0x80] sm:$0xff] }
   0x9   :  { %1572 = vmatprep.subr.bf16.mxu0 %v1732_v0  ;;  %v46_v29 = vld [vmem:[%s2515_s0 + $0x88] sm:$0xff]  ;;  %v47_v30 = vld [vmem:[%s2515_s0 + $0x90] sm:$0xff]  ;;  %v48_v31 = vld [vmem:[%s2515_s0 + $0x98] sm:$0xff] }
   0xa   :  { %v49_v32 = vld [vmem:[%s2515_s0 + $0xa0] sm:$0xff]  ;;  %v50_v33 = vld [vmem:[%s2515_s0 + $0xa8] sm:$0xff]  ;;  %v51_v34 = vld [vmem:[%s2515_s0 + $0xb0] sm:$0xff] }
   0xb   :  { %v52_v35 = vld [vmem:[%s2515_s0 + $0xb8] sm:$0xff]  ;;  %v53_v36 = vld [vmem:[%s2515_s0 + $0xc0] sm:$0xff]  ;;  %v54_v37 = vld [vmem:[%s2515_s0 + $0xc8] sm:$0xff] }
   0xc   :  { %1574 = vmatpush3.bf16.msra.mxu0 %v1573_v10  ;;  %v55_v38 = vld [vmem:[%s2515_s0 + $0xd0] sm:$0xff]  ;;  %v56_v39 = vld [vmem:[%s2515_s0 + $0xd8] sm:$0xff]  ;;  %v57_v40 = vld [vmem:[%s2515_s0 + $0xe0] sm:$0xff] }
   0xd   :  { %1417 = vmatprep.subr.mxu0 %v1734_v4  ;;  %v58_v41 = vld [vmem:[%s2515_s0 + $0xe8] sm:$0xff]  ;;  %v59_v42 = vld [vmem:[%s2515_s0 + $0xf0] sm:$0xff]  ;;  %v60_v43 = vld [vmem:[%s2515_s0 + $0xf8] sm:$0xff] }
   0xe   :  { %v61_v44 = vld [vmem:[%s2515_s0 + $0x100] sm:$0xff]  ;;  %v62_v45 = vld [vmem:[%s2515_s0 + $0x108] sm:$0xff]  ;;  %v63_v46 = vld [vmem:[%s2515_s0 + $0x110] sm:$0xff] }
   0xf   :  { %v64_v47 = vld [vmem:[%s2515_s0 + $0x118] sm:$0xff]  ;;  %v65_v48 = vld [vmem:[%s2515_s0 + $0x120] sm:$0xff]  ;;  %v66_v49 = vld [vmem:[%s2515_s0 + $0x128] sm:$0xff] }
  0x10   :  { %1418 = vmatpush3.msk.msra.mxu0 %vm240_vm1, %v84_v11  ;;  %v67_v50 = vld [vmem:[%s2515_s0 + $0x130] sm:$0xff]  ;;  %v68_v51 = vld [vmem:[%s2515_s0 + $0x138] sm:$0xff]  ;;  %v69_v52 = vld [vmem:[%s2515_s0 + $0x140] sm:$0xff] }
  0x11   :  { %1420 = vmatmul.mubr.msk.f32.vlgmr.msra.gmra.mrb[0].mxu0 %vm92_vm2, %v29_v12  ;;  %v70_v53 = vld [vmem:[%s2515_s0 + $0x148] sm:$0xff]  ;;  %v71_v54 = vld [vmem:[%s2515_s0 + $0x150] sm:$0xff]  ;;  %v72_v55 = vld [vmem:[%s2515_s0 + $0x158] sm:$0xff] }
  0x12   :  { %1422 = vmatprep.mubr.msk.f32.mxu0 %vm1733_vm0, %v1734_v4  ;;  %v73_v56 = vld [vmem:[%s2515_s0 + $0x160] sm:$0xff]  ;;  %v74_v57 = vld [vmem:[%s2515_s0 + $0x168] sm:$0xff]  ;;  %v75_v58 = vld [vmem:[%s2515_s0 + $0x170] sm:$0xff] }
  0x13   :  { %v76_v59 = vld [vmem:[%s2515_s0 + $0x178] sm:$0xff]  ;;  %v77_v60 = vld [vmem:[%s2515_s0 + $0x180] sm:$0xff] }
  0x14   :  { %v2103_v61 = vld [vmem:[%s2516_s3] ss:$0 sm:$0xff] }
  0x15   :  { %1423 = vmatmul.mubr.msk.f32.gmra.mrb[2].mxu0 %vm92_vm2, %v30_v13  ;;  %v603_v12 = vld [vmem:[%s2517_s1] sm:$0xff] }
  0x16   :  { %1425 = vmatprep.mubr.msk.f32.mxu0 %vm1733_vm0, %v1734_v4  ;;  %v2113_v13 = vrot.slane %v603_v12, %v611_v9 }
  0x19   :  { %1426 = vmatmul.mubr.msk.f32.gmra.mrb[4].mxu0 %vm92_vm2, %v31_v14 }
  0x1a   :  { %1428 = vmatprep.mubr.msk.f32.mxu0 %vm1733_vm0, %v1734_v4 }
  0x1d   :  { %1429 = vmatmul.mubr.msk.f32.gmra.mrb[6].mxu0 %vm92_vm2, %v32_v15 }
  0x1e   :  { %1431 = vmatprep.mubr.msk.f32.mxu0 %vm1733_vm0, %v1734_v4 }
  0x21   :  { %1432 = vmatmul.mubr.msk.f32.gmra.mrb[8].mxu0 %vm92_vm2, %v33_v16 }
  0x22   :  { %1434 = vmatprep.mubr.msk.f32.mxu0 %vm1733_vm0, %v1734_v4 }
  0x25   :  { %1435 = vmatmul.mubr.msk.f32.gmra.mrb[10].mxu0 %vm92_vm2, %v34_v17  ;;  %v620_v17 = vcombine.high %v2113_v13, %v2113_v13 }
  0x26   :  { %1437 = vmatprep.mubr.msk.f32.mxu0 %vm1733_vm0, %v1734_v4 }
  0x27   :  { %692 = vmatprep.mubr.f32.mxu1 %v620_v17 }
  0x29   :  { %1438 = vmatmul.mubr.msk.f32.gmra.mrb[12].mxu0 %vm92_vm2, %v35_v18 }
  0x2a   :  { %1440 = vmatprep.mubr.msk.f32.mxu0 %vm1733_vm0, %v1734_v4 }
  0x2d   :  { %1441 = vmatmul.mubr.msk.f32.gmra.mrb[14].mxu0 %vm92_vm2, %v36_v19 }
  0x2e   :  { %1443 = vmatprep.mubr.msk.f32.mxu0 %vm1733_vm0, %v1734_v4 }
  0x31   :  { %1444 = vmatmul.mubr.msk.f32.gmra.mrb[16].mxu0 %vm92_vm2, %v37_v20 }
  0x32   :  { %1446 = vmatprep.mubr.msk.f32.mxu0 %vm1733_vm0, %v1734_v4 }
  0x35   :  { %1447 = vmatmul.mubr.msk.f32.gmra.mrb[18].mxu0 %vm92_vm2, %v38_v21  ;;  %v605_v21 = vcombine.high %v603_v12, %v603_v12 }
  0x36   :  { %1449 = vmatprep.mubr.msk.f32.mxu0 %vm1733_vm0, %v1734_v4 }
  0x39   :  { %1450 = vmatmul.mubr.msk.f32.gmra.mrb[20].mxu0 %vm92_vm2, %v39_v22 }
  0x3a   :  { %1452 = vmatprep.mubr.msk.f32.mxu0 %vm1733_vm0, %v1734_v4 }
  0x3d   :  { %1453 = vmatmul.mubr.msk.f32.gmra.mrb[22].mxu0 %vm92_vm2, %v40_v23 }
  0x3e   :  { %1455 = vmatprep.mubr.msk.f32.mxu0 %vm1733_vm0, %v1734_v4 }
  0x41   :  { %1456 = vmatmul.mubr.msk.f32.gmra.mrb[24].mxu0 %vm92_vm2, %v41_v24 }
  0x42   :  { %1458 = vmatprep.mubr.msk.f32.mxu0 %vm1733_vm0, %v1734_v4 }
  0x45   :  { %1459 = vmatmul.mubr.msk.f32.gmra.mrb[26].mxu0 %vm92_vm2, %v42_v25  ;;  %v2121_v25 = vrot.slane %v605_v21, %v611_v9 }
  0x46   :  { %1461 = vmatprep.mubr.msk.f32.mxu0 %vm1733_vm0, %v1734_v4 }
  0x49   :  { %1462 = vmatmul.mubr.msk.f32.gmra.mrb[28].mxu0 %vm92_vm2, %v43_v26 }
  0x4a   :  { %1464 = vmatprep.mubr.msk.f32.mxu0 %vm1733_vm0, %v1734_v4 }
  0x4d   :  { %1465 = vmatmul.mubr.msk.f32.gmra.mrb[30].mxu0 %vm92_vm2, %v44_v27 }
  0x4e   :  { %1467 = vmatprep.mubr.msk.f32.mxu0 %vm1733_vm0, %v1734_v4 }
  0x51   :  { %1468 = vmatmul.mubr.msk.f32.gmra.mrb[32].mxu0 %vm92_vm2, %v45_v28 }
  0x52   :  { %1470 = vmatprep.mubr.msk.f32.mxu0 %vm1733_vm0, %v1734_v4 }
  0x55   :  { %1471 = vmatmul.mubr.msk.f32.gmra.mrb[34].mxu0 %vm92_vm2, %v46_v29 }
  0x56   :  { %1473 = vmatprep.mubr.msk.f32.mxu0 %vm1733_vm0, %v1734_v4 }
  0x59   :  { %1474 = vmatmul.mubr.msk.f32.gmra.mrb[36].mxu0 %vm92_vm2, %v47_v30 }
  0x5a   :  { %1476 = vmatprep.mubr.msk.f32.mxu0 %vm1733_vm0, %v1734_v4 }
  0x5d   :  { %1477 = vmatmul.mubr.msk.f32.gmra.mrb[38].mxu0 %vm92_vm2, %v48_v31 }
  0x5e   :  { %1479 = vmatprep.mubr.msk.f32.mxu0 %vm1733_vm0, %v1734_v4 }
  0x61   :  { %1480 = vmatmul.mubr.msk.f32.gmra.mrb[40].mxu0 %vm92_vm2, %v49_v32 }
  0x62   :  { %1482 = vmatprep.mubr.msk.f32.mxu0 %vm1733_vm0, %v1734_v4 }
  0x65   :  { %1483 = vmatmul.mubr.msk.f32.gmra.mrb[42].mxu0 %vm92_vm2, %v50_v33 }
  0x66   :  { %1485 = vmatprep.mubr.msk.f32.mxu0 %vm1733_vm0, %v1734_v4 }
  0x69   :  { %1486 = vmatmul.mubr.msk.f32.gmra.mrb[44].mxu0 %vm92_vm2, %v51_v34 }
  0x6a   :  { %1488 = vmatprep.mubr.msk.f32.mxu0 %vm1733_vm0, %v1734_v4 }
  0x6d   :  { %1489 = vmatmul.mubr.msk.f32.gmra.mrb[46].mxu0 %vm92_vm2, %v52_v35 }
  0x6e   :  { %1491 = vmatprep.mubr.msk.f32.mxu0 %vm1733_vm0, %v1734_v4 }
  0x71   :  { %1492 = vmatmul.mubr.msk.f32.gmra.mrb[48].mxu0 %vm92_vm2, %v53_v36 }
  0x72   :  { %1494 = vmatprep.mubr.msk.f32.mxu0 %vm1733_vm0, %v1734_v4 }
  0x75   :  { %1495 = vmatmul.mubr.msk.f32.gmra.mrb[50].mxu0 %vm92_vm2, %v54_v37 }
  0x76   :  { %1497 = vmatprep.mubr.msk.f32.mxu0 %vm1733_vm0, %v1734_v4 }
  0x79   :  { %1498 = vmatmul.mubr.msk.f32.gmra.mrb[52].mxu0 %vm92_vm2, %v55_v38 }
  0x7a   :  { %1500 = vmatprep.mubr.msk.f32.mxu0 %vm1733_vm0, %v1734_v4 }
  0x7d   :  { %1501 = vmatmul.mubr.msk.f32.gmra.mrb[54].mxu0 %vm92_vm2, %v56_v39 }
  0x7e   :  { %1503 = vmatprep.mubr.msk.f32.mxu0 %vm1733_vm0, %v1734_v4 }
  0x81   :  { %1504 = vmatmul.mubr.msk.f32.gmra.mrb[56].mxu0 %vm92_vm2, %v57_v40 }
  0x82   :  { %1506 = vmatprep.mubr.msk.f32.mxu0 %vm1733_vm0, %v1734_v4 }
  0x85   :  { %1507 = vmatmul.mubr.msk.f32.gmra.mrb[58].mxu0 %vm92_vm2, %v58_v41 }
  0x86   :  { %1509 = vmatprep.mubr.msk.f32.mxu0 %vm1733_vm0, %v1734_v4 }
  0x89   :  { %1510 = vmatmul.mubr.msk.f32.gmra.mrb[60].mxu0 %vm92_vm2, %v59_v42 }
  0x8a   :  { %1512 = vmatprep.mubr.msk.f32.mxu0 %vm1733_vm0, %v1734_v4 }
  0x8d   :  { %1513 = vmatmul.mubr.msk.f32.gmra.mrb[62].mxu0 %vm92_vm2, %v60_v43 }
  0x8e   :  { %1515 = vmatprep.mubr.msk.f32.mxu0 %vm1733_vm0, %v1734_v4 }
  0x91   :  { %1516 = vmatmul.mubr.msk.f32.gmra.mrb[64].mxu0 %vm92_vm2, %v61_v44 }
  0x92   :  { %1518 = vmatprep.mubr.msk.f32.mxu0 %vm1733_vm0, %v1734_v4 }
  0x95   :  { %1519 = vmatmul.mubr.msk.f32.gmra.mrb[66].mxu0 %vm92_vm2, %v62_v45 }
  0x96   :  { %1521 = vmatprep.mubr.msk.f32.mxu0 %vm1733_vm0, %v1734_v4 }
  0x99   :  { %1522 = vmatmul.mubr.msk.f32.gmra.mrb[68].mxu0 %vm92_vm2, %v63_v46 }
  0x9a   :  { %1524 = vmatprep.mubr.msk.f32.mxu0 %vm1733_vm0, %v1734_v4 }
  0x9d   :  { %1525 = vmatmul.mubr.msk.f32.gmra.mrb[70].mxu0 %vm92_vm2, %v64_v47 }
  0x9e   :  { %1527 = vmatprep.mubr.msk.f32.mxu0 %vm1733_vm0, %v1734_v4 }
  0xa1   :  { %1528 = vmatmul.mubr.msk.f32.gmra.mrb[72].mxu0 %vm92_vm2, %v65_v48 }
  0xa2   :  { %1530 = vmatprep.mubr.msk.f32.mxu0 %vm1733_vm0, %v1734_v4 }
  0xa5   :  { %1531 = vmatmul.mubr.msk.f32.gmra.mrb[74].mxu0 %vm92_vm2, %v66_v49 }
  0xa6   :  { %1533 = vmatprep.mubr.msk.f32.mxu0 %vm1733_vm0, %v1734_v4 }
  0xa9   :  { %1534 = vmatmul.mubr.msk.f32.gmra.mrb[76].mxu0 %vm92_vm2, %v67_v50 }
  0xaa   :  { %1536 = vmatprep.mubr.msk.f32.mxu0 %vm1733_vm0, %v1734_v4 }
  0xad   :  { %1537 = vmatmul.mubr.msk.f32.gmra.mrb[78].mxu0 %vm92_vm2, %v68_v51 }
  0xae   :  { %1539 = vmatprep.mubr.msk.f32.mxu0 %vm1733_vm0, %v1734_v4 }
  0xb1   :  { %1540 = vmatmul.mubr.msk.f32.gmra.mrb[80].mxu0 %vm92_vm2, %v69_v52 }
  0xb2   :  { %1542 = vmatprep.mubr.msk.f32.mxu0 %vm1733_vm0, %v1734_v4 }
  0xb5   :  { %1543 = vmatmul.mubr.msk.f32.gmra.mrb[82].mxu0 %vm92_vm2, %v70_v53 }
  0xb6   :  { %1545 = vmatprep.mubr.msk.f32.mxu0 %vm1733_vm0, %v1734_v4 }
  0xb9   :  { %1546 = vmatmul.mubr.msk.f32.gmra.mrb[84].mxu0 %vm92_vm2, %v71_v54 }
  0xba   :  { %1548 = vmatprep.mubr.msk.f32.mxu0 %vm1733_vm0, %v1734_v4 }
  0xbd   :  { %1549 = vmatmul.mubr.msk.f32.gmra.mrb[86].mxu0 %vm92_vm2, %v72_v55 }
  0xbe   :  { %1551 = vmatprep.mubr.msk.f32.mxu0 %vm1733_vm0, %v1734_v4 }
  0xc1   :  { %1552 = vmatmul.mubr.msk.f32.gmra.mrb[88].mxu0 %vm92_vm2, %v73_v56 }
  0xc2   :  { %1554 = vmatprep.mubr.msk.f32.mxu0 %vm1733_vm0, %v1734_v4 }
  0xc5   :  { %1555 = vmatmul.mubr.msk.f32.gmra.mrb[90].mxu0 %vm92_vm2, %v74_v57 }
  0xc6   :  { %1557 = vmatprep.mubr.msk.f32.mxu0 %vm1733_vm0, %v1734_v4 }
  0xc9   :  { %1558 = vmatmul.mubr.msk.f32.gmra.mrb[92].mxu0 %vm92_vm2, %v75_v58 }
  0xca   :  { %1560 = vmatprep.mubr.msk.f32.mxu0 %vm1733_vm0, %v1734_v4 }
  0xcd   :  { %1561 = vmatmul.mubr.msk.f32.gmra.mrb[94].mxu0 %vm92_vm2, %v76_v59 }
  0xce   :  { %1563 = vmatprep.mubr.msk.f32.mxu0 %vm1733_vm0, %v1734_v4 }
  0xd1   :  { %1564 = vmatmul.mubr.msk.f32.gmra.mrb[96].mxu0 %vm92_vm2, %v77_v60 }
  0xe4   :  { %v310_v62 = vpop.f32.mrb[0].mxu0 }
  0xe5   :  { %v1421_v3 = vpop.f32.mrb[1].mxu0  ;;  %v311_v7 = vadd.f32 %v2103_v61, %v310_v62 }
  0xe7   :  { %v554_v14 = vmax.f32 %v311_v7, 0.0 }
  0xe8   :  { %v315_v8 = vpop.f32.mrb[2].mxu0 }
  0xe9   :  { %v316_v10 = vadd.f32 %v2103_v61, %v315_v8  ;;  %v1424_v11 = vpop.f32.mrb[3].mxu0 }
  0xeb   :  { %v555_v15 = vmax.f32 %v316_v10, 0.0 }
  0xec   :  { %v320_v16 = vpop.f32.mrb[4].mxu0 }
  0xed   :  { %v1427_v18 = vpop.f32.mrb[5].mxu0  ;;  %v2117_v19 = vpack.c.bf16 %v555_v15, %v554_v14  ;;  %v321_v20 = vadd.f32 %v2103_v61, %v320_v16 }
  0xef   :  { %v556_v26 = vmax.f32 %v321_v20, 0.0 }
  0xf0   :  { %v325_v22 = vpop.f32.mrb[6].mxu0 }
  0xf1   :  { %v326_v23 = vadd.f32 %v2103_v61, %v325_v22  ;;  %v1430_v24 = vpop.f32.mrb[7].mxu0 }
  0xf3   :  { %v557_v27 = vmax.f32 %v326_v23, 0.0 }
  0xf4   :  { %v330_v28 = vpop.f32.mrb[8].mxu0 }
  0xf5   :  { %v2123_v29 = vpack.c.bf16 %v557_v27, %v556_v26  ;;  %v1433_v30 = vpop.f32.mrb[9].mxu0  ;;  %v331_v31 = vadd.f32 %v2103_v61, %v330_v28 }
  0xf7   :  { %v558_v35 = vmax.f32 %v331_v31, 0.0 }
  0xf8   :  { %v335_v32 = vpop.f32.mrb[10].mxu0 }
  0xf9   :  { %v336_v33 = vadd.f32 %v2103_v61, %v335_v32  ;;  %v1436_v34 = vpop.f32.mrb[11].mxu0 }
  0xfb   :  { %v559_v36 = vmax.f32 %v336_v33, 0.0 }
  0xfc   :  { %v340_v37 = vpop.f32.mrb[12].mxu0 }
  0xfd   :  { %v2127_v38 = vpack.c.bf16 %v559_v36, %v558_v35  ;;  %v1439_v39 = vpop.f32.mrb[13].mxu0  ;;  %v341_v40 = vadd.f32 %v2103_v61, %v340_v37 }
  0xff   :  { %v560_v44 = vmax.f32 %v341_v40, 0.0 }
 0x100   :  { %v345_v41 = vpop.f32.mrb[14].mxu0 }
 0x101   :  { %v346_v42 = vadd.f32 %v2103_v61, %v345_v41  ;;  %v1442_v43 = vpop.f32.mrb[15].mxu0 }
 0x103   :  { %v561_v45 = vmax.f32 %v346_v42, 0.0 }
 0x104   :  { %v350_v46 = vpop.f32.mrb[16].mxu0 }
 0x105   :  { %v2131_v47 = vpack.c.bf16 %v561_v45, %v560_v44  ;;  %v1445_v48 = vpop.f32.mrb[17].mxu0  ;;  %v351_v49 = vadd.f32 %v2103_v61, %v350_v46 }
 0x107   :  { %v562_v53 = vmax.f32 %v351_v49, 0.0 }
 0x108   :  { %v355_v50 = vpop.f32.mrb[18].mxu0 }
 0x109   :  { %v356_v51 = vadd.f32 %v2103_v61, %v355_v50  ;;  %v1448_v52 = vpop.f32.mrb[19].mxu0 }
 0x10b   :  { %v563_v54 = vmax.f32 %v356_v51, 0.0 }
 0x10c   :  { %v360_v55 = vpop.f32.mrb[20].mxu0 }
 0x10d   :  { %v2135_v56 = vpack.c.bf16 %v563_v54, %v562_v53  ;;  %v1451_v57 = vpop.f32.mrb[21].mxu0  ;;  %v361_v58 = vadd.f32 %v2103_v61, %v360_v55 }
 0x10f   :  { %v564_v63 = vmax.f32 %v361_v58, 0.0 }
 0x110   :  { %v365_v59 = vpop.f32.mrb[22].mxu0 }
 0x111   :  { %v366_v60 = vadd.f32 %v2103_v61, %v365_v59  ;;  %v1454_v62 = vpop.f32.mrb[23].mxu0 }
 0x113   :  { %v565_v1 = vmax.f32 %v366_v60, 0.0 }
 0x114   :  { %v370_v2 = vpop.f32.mrb[24].mxu0 }
 0x115   :  { %v2139_v3 = vpack.c.bf16 %v565_v1, %v564_v63  ;;  %v1457_v5 = vpop.f32.mrb[25].mxu0  ;;  %v371_v7 = vadd.f32 %v2103_v61, %v370_v2 }
 0x117   :  { %v566_v11 = vmax.f32 %v371_v7, 0.0 }
 0x118   :  { %v375_v8 = vpop.f32.mrb[26].mxu0 }
 0x119   :  { %v376_v9 = vadd.f32 %v2103_v61, %v375_v8  ;;  %v1460_v10 = vpop.f32.mrb[27].mxu0 }
 0x11b   :  { %v567_v12 = vmax.f32 %v376_v9, 0.0 }
 0x11c   :  { %v380_v14 = vpop.f32.mrb[28].mxu0 }
 0x11d   :  { %v2143_v15 = vpack.c.bf16 %v567_v12, %v566_v11  ;;  %v1463_v16 = vpop.f32.mrb[29].mxu0  ;;  %v381_v17 = vadd.f32 %v2103_v61, %v380_v14 }
 0x11f   :  { %v568_v22 = vmax.f32 %v381_v17, 0.0 }
 0x120   :  { %v385_v18 = vpop.f32.mrb[30].mxu0 }
 0x121   :  { %v386_v20 = vadd.f32 %v2103_v61, %v385_v18  ;;  %v1466_v21 = vpop.f32.mrb[31].mxu0 }
 0x123   :  { %v569_v23 = vmax.f32 %v386_v20, 0.0 }
 0x124   :  { %v390_v24 = vpop.f32.mrb[32].mxu0 }
 0x125   :  { %v2147_v26 = vpack.c.bf16 %v569_v23, %v568_v22  ;;  %v1469_v27 = vpop.f32.mrb[33].mxu0  ;;  %v391_v28 = vadd.f32 %v2103_v61, %v390_v24 }
 0x127   :  { %v570_v33 = vmax.f32 %v391_v28, 0.0 }
 0x128   :  { %v395_v30 = vpop.f32.mrb[34].mxu0 }
 0x129   :  { %v396_v31 = vadd.f32 %v2103_v61, %v395_v30  ;;  %v1472_v32 = vpop.f32.mrb[35].mxu0 }
 0x12b   :  { %v571_v34 = vmax.f32 %v396_v31, 0.0 }
 0x12c   :  { %v400_v35 = vpop.f32.mrb[36].mxu0 }
 0x12d   :  { %v1475_v36 = vpop.f32.mrb[37].mxu0  ;;  %v1575_v37 = vpack.c.bf16 %v571_v34, %v570_v33  ;;  %v401_v39 = vadd.f32 %v2103_v61, %v400_v35 }
 0x12f   :  { %1576 = vmatprep.subr.bf16.mxu1 %v1575_v37  ;;  %v572_v43 = vmax.f32 %v401_v39, 0.0 }
 0x130   :  { %v405_v40 = vpop.f32.mrb[38].mxu0  ;;  %1578 = vmatpush3.bf16.msra.mxu1 %v2117_v19 }
 0x131   :  { %v406_v41 = vadd.f32 %v2103_v61, %v405_v40  ;;  %v1478_v42 = vpop.f32.mrb[39].mxu0 }
 0x133   :  { %v573_v44 = vmax.f32 %v406_v41, 0.0 }
 0x134   :  { %v410_v45 = vpop.f32.mrb[40].mxu0 }
 0x135   :  { %v1579_v46 = vpack.c.bf16 %v573_v44, %v572_v43  ;;  %v1481_v48 = vpop.f32.mrb[41].mxu0  ;;  %v411_v49 = vadd.f32 %v2103_v61, %v410_v45 }
 0x137   :  { %1580 = vmatprep.subr.bf16.mxu1 %v1579_v46  ;;  %v574_v53 = vmax.f32 %v411_v49, 0.0  ;;  %v621_v49 = vcombine.high %v2121_v25, %v2121_v25 }
 0x138   :  { %v415_v50 = vpop.f32.mrb[42].mxu0  ;;  %1582 = vmatpush3.bf16.msra.mxu1 %v2123_v29 }
 0x139   :  { %v416_v51 = vadd.f32 %v2103_v61, %v415_v50  ;;  %v1484_v52 = vpop.f32.mrb[43].mxu0 }
 0x13b   :  { %v575_v54 = vmax.f32 %v416_v51, 0.0 }
 0x13c   :  { %v420_v19 = vpop.f32.mrb[44].mxu0 }
 0x13d   :  { %v1583_v55 = vpack.c.bf16 %v575_v54, %v574_v53  ;;  %v1487_v57 = vpop.f32.mrb[45].mxu0  ;;  %v421_v58 = vadd.f32 %v2103_v61, %v420_v19 }
 0x13f   :  { %1584 = vmatprep.subr.bf16.mxu1 %v1583_v55  ;;  %v576_v63 = vmax.f32 %v421_v58, 0.0 }
 0x140   :  { %v425_v59 = vpop.f32.mrb[46].mxu0  ;;  %1586 = vmatpush3.bf16.msra.mxu1 %v2127_v38 }
 0x141   :  { %v426_v60 = vadd.f32 %v2103_v61, %v425_v59  ;;  %v1490_v62 = vpop.f32.mrb[47].mxu0 }
 0x143   :  { %v577_v1 = vmax.f32 %v426_v60, 0.0 }
 0x144   :  { %v430_v29 = vpop.f32.mrb[48].mxu0 }
 0x145   :  { %v1587_v2 = vpack.c.bf16 %v577_v1, %v576_v63  ;;  %v1493_v5 = vpop.f32.mrb[49].mxu0  ;;  %v431_v7 = vadd.f32 %v2103_v61, %v430_v29 }
 0x147   :  { %1588 = vmatprep.subr.bf16.mxu1 %v1587_v2  ;;  %v578_v11 = vmax.f32 %v431_v7, 0.0 }
 0x148   :  { %v435_v8 = vpop.f32.mrb[50].mxu0  ;;  %1590 = vmatpush3.bf16.msra.mxu1 %v2131_v47 }
 0x149   :  { %v436_v9 = vadd.f32 %v2103_v61, %v435_v8  ;;  %v1496_v10 = vpop.f32.mrb[51].mxu0 }
 0x14b   :  { %v579_v12 = vmax.f32 %v436_v9, 0.0 }
 0x14c   :  { %v440_v38 = vpop.f32.mrb[52].mxu0 }
 0x14d   :  { %v1591_v14 = vpack.c.bf16 %v579_v12, %v578_v11  ;;  %v1499_v16 = vpop.f32.mrb[53].mxu0  ;;  %v441_v17 = vadd.f32 %v2103_v61, %v440_v38 }
 0x14f   :  { %1592 = vmatprep.subr.bf16.mxu1 %v1591_v14  ;;  %v580_v22 = vmax.f32 %v441_v17, 0.0 }
 0x150   :  { %v445_v18 = vpop.f32.mrb[54].mxu0  ;;  %1594 = vmatpush3.bf16.msra.mxu1 %v2135_v56 }
 0x151   :  { %v446_v20 = vadd.f32 %v2103_v61, %v445_v18  ;;  %v1502_v21 = vpop.f32.mrb[55].mxu0 }
 0x153   :  { %v581_v23 = vmax.f32 %v446_v20, 0.0 }
 0x154   :  { %v450_v47 = vpop.f32.mrb[56].mxu0 }
 0x155   :  { %v1595_v24 = vpack.c.bf16 %v581_v23, %v580_v22  ;;  %v1505_v27 = vpop.f32.mrb[57].mxu0  ;;  %v451_v28 = vadd.f32 %v2103_v61, %v450_v47 }
 0x157   :  { %1596 = vmatprep.subr.bf16.mxu1 %v1595_v24  ;;  %v582_v33 = vmax.f32 %v451_v28, 0.0 }
 0x158   :  { %v455_v30 = vpop.f32.mrb[58].mxu0  ;;  %1598 = vmatpush3.bf16.msra.mxu1 %v2139_v3 }
 0x159   :  { %v456_v31 = vadd.f32 %v2103_v61, %v455_v30  ;;  %v1508_v32 = vpop.f32.mrb[59].mxu0 }
 0x15b   :  { %v583_v34 = vmax.f32 %v456_v31, 0.0 }
 0x15c   :  { %v460_v56 = vpop.f32.mrb[60].mxu0 }
 0x15d   :  { %v1599_v35 = vpack.c.bf16 %v583_v34, %v582_v33  ;;  %v1511_v36 = vpop.f32.mrb[61].mxu0  ;;  %v461_v37 = vadd.f32 %v2103_v61, %v460_v56 }
 0x15f   :  { %1600 = vmatprep.subr.bf16.mxu1 %v1599_v35  ;;  %v584_v42 = vmax.f32 %v461_v37, 0.0 }
 0x160   :  { %v465_v39 = vpop.f32.mrb[62].mxu0  ;;  %1602 = vmatpush3.bf16.msra.mxu1 %v2143_v15 }
 0x161   :  { %v466_v40 = vadd.f32 %v2103_v61, %v465_v39  ;;  %v1514_v41 = vpop.f32.mrb[63].mxu0 }
 0x163   :  { %v585_v43 = vmax.f32 %v466_v40, 0.0 }
 0x164   :  { %v470_v3 = vpop.f32.mrb[64].mxu0 }
 0x165   :  { %v1603_v44 = vpack.c.bf16 %v585_v43, %v584_v42  ;;  %v1517_v45 = vpop.f32.mrb[65].mxu0  ;;  %v471_v46 = vadd.f32 %v2103_v61, %v470_v3 }
 0x167   :  { %1604 = vmatprep.subr.bf16.mxu1 %v1603_v44  ;;  %v586_v51 = vmax.f32 %v471_v46, 0.0 }
 0x168   :  { %v475_v48 = vpop.f32.mrb[66].mxu0  ;;  %1606 = vmatpush3.bf16.msra.mxu1 %v2147_v26 }
 0x169   :  { %v476_v50 = vadd.f32 %v2103_v61, %v475_v48  ;;  %v1520_v15 = vpop.f32.mrb[67].mxu0  ;;  %1607 = vmatprep.subr.bf16.mxu1 %v1732_v0 }
 0x16b   :  { %v587_v52 = vmax.f32 %v476_v50, 0.0  ;;  %693 = vmatmul.mubr.f32.vlgmr.msra.gmra.mrb[0].mxu1 %v2113_v13 }
 0x16c   :  { %v480_v53 = vpop.f32.mrb[68].mxu0  ;;  %1240 = vmatprep.mubr.msk.f32.mxu1 %vm625_vm3, %v621_v49 }
 0x16d   :  { %v1608_v54 = vpack.c.bf16 %v587_v52, %v586_v51  ;;  %v1523_v19 = vpop.f32.mrb[69].mxu0  ;;  %v481_v55 = vadd.f32 %v2103_v61, %v480_v53 }
 0x16f   :  { %1609 = vmatpush1.bf16.msra.mxu1 %v1608_v54  ;;  %v588_v59 = vmax.f32 %v481_v55, 0.0 }
 0x170   :  { %v485_v26 = vpop.f32.mrb[70].mxu0  ;;  %1610 = vmatprep.subr.bf16.mxu1 %v1732_v0 }
 0x171   :  { %v486_v57 = vadd.f32 %v2103_v61, %v485_v26  ;;  %v1526_v58 = vpop.f32.mrb[71].mxu0 }
 0x173   :  { %v589_v60 = vmax.f32 %v486_v57, 0.0 }
 0x174   :  { %v490_v62 = vpop.f32.mrb[72].mxu0 }
 0x175   :  { %v1611_v63 = vpack.c.bf16 %v589_v60, %v588_v59  ;;  %v1529_v1 = vpop.f32.mrb[73].mxu0  ;;  %v491_v13 = vadd.f32 %v2103_v61, %v490_v62  ;;  %v773_v62 = vld [vmem:[%s2518_s4 + $0x28] sm:$0xff] }
 0x176   :  { %v772_v1 = vld [vmem:[%s2518_s4 + $0x20] sm:$0xff] }
 0x177   :  { %1612 = vmatpush1.bf16.msra.mxu1 %v1611_v63  ;;  %v590_v7 = vmax.f32 %v491_v13, 0.0  ;;  %v781_v13 = vld [vmem:[%s2518_s4 + $0x68] sm:$0xff] }
 0x178   :  { %v495_v29 = vpop.f32.mrb[74].mxu0  ;;  %1613 = vmatprep.subr.bf16.mxu1 %v1732_v0 }
 0x179   :  { %v496_v2 = vadd.f32 %v2103_v61, %v495_v29  ;;  %v1532_v5 = vpop.f32.mrb[75].mxu0 }
 0x17a   :  { %v776_v5 = vld [vmem:[%s2518_s4 + $0x40] sm:$0xff] }
 0x17b   :  { %v591_v8 = vmax.f32 %v496_v2, 0.0 }
 0x17c   :  { %v500_v9 = vpop.f32.mrb[76].mxu0 }
 0x17d   :  { %v1614_v10 = vpack.c.bf16 %v591_v8, %v590_v7  ;;  %v1535_v11 = vpop.f32.mrb[77].mxu0  ;;  %v501_v12 = vadd.f32 %v2103_v61, %v500_v9  ;;  %v780_v7 = vld [vmem:[%s2518_s4 + $0x60] sm:$0xff]  ;;  %v785_v8 = vld [vmem:[%s2518_s4 + $0x88] sm:$0xff] }
 0x17e   :  { %v789_v9 = vld [vmem:[%s2518_s4 + $0xa8] sm:$0xff] }
 0x17f   :  { %1615 = vmatpush1.bf16.msra.mxu1 %v1614_v10  ;;  %v592_v17 = vmax.f32 %v501_v12, 0.0  ;;  %v1637_v10 = vpack.c.bf16 %v780_v7, %v776_v5  ;;  %v1639_v11 = vpack.c.bf16 %v789_v9, %v785_v8  ;;  %v784_v12 = vld [vmem:[%s2518_s4 + $0x80] sm:$0xff]  ;;  %v995_v5 = vld [vmem:[%s2519_s6 + $0xb8] sm:$0xff]  ;;  %v978_v9 = vld [vmem:[%s2519_s6 + $0x30] sm:$0xff] }
 0x180   :  { %v505_v38 = vpop.f32.mrb[78].mxu0  ;;  %1616 = vmatprep.subr.bf16.mxu1 %v1732_v0 }
 0x181   :  { %v506_v14 = vadd.f32 %v2103_v61, %v505_v38  ;;  %v1538_v16 = vpop.f32.mrb[79].mxu0  ;;  %v788_v38 = vld [vmem:[%s2518_s4 + $0xa0] sm:$0xff] }
 0x182   :  { %v797_v16 = vld [vmem:[%s2518_s4 + $0xe8] sm:$0xff] }
 0x183   :  { %v593_v18 = vmax.f32 %v506_v14, 0.0  ;;  %v793_v14 = vld [vmem:[%s2518_s4 + $0xc8] sm:$0xff] }
 0x184   :  { %v510_v20 = vpop.f32.mrb[80].mxu0 }
 0x185   :  { %v1617_v21 = vpack.c.bf16 %v593_v18, %v592_v17  ;;  %v1541_v22 = vpop.f32.mrb[81].mxu0  ;;  %v511_v23 = vadd.f32 %v2103_v61, %v510_v20  ;;  %v1641_v17 = vpack.c.bf16 %v788_v38, %v784_v12  ;;  %v1643_v18 = vpack.c.bf16 %v797_v16, %v793_v14  ;;  %v792_v20 = vld [vmem:[%s2518_s4 + $0xc0] sm:$0xff]  ;;  %v997_v12 = vld [vmem:[%s2519_s6 + $0xc8] sm:$0xff] }
 0x186   :  { %v980_v16 = vld [vmem:[%s2519_s6 + $0x40] sm:$0xff] }
 0x187   :  { %1618 = vmatpush1.bf16.msra.mxu1 %v1617_v21  ;;  %v594_v28 = vmax.f32 %v511_v23, 0.0  ;;  %v796_v21 = vld [vmem:[%s2518_s4 + $0xe0] sm:$0xff]  ;;  %v771_v23 = vld [vmem:[%s2518_s4 + $0x18] sm:$0xff] }
 0x188   :  { %v515_v47 = vpop.f32.mrb[82].mxu0  ;;  %1619 = vmatprep.subr.bf16.mxu1 %v1732_v0  ;;  %v1645_v22 = vpack.c.bf16 %v796_v21, %v792_v20  ;;  %v999_v20 = vld [vmem:[%s2519_s6 + $0xd8] sm:$0xff] }
 0x189   :  { %v516_v24 = vadd.f32 %v2103_v61, %v515_v47  ;;  %v1544_v27 = vpop.f32.mrb[83].mxu0  ;;  %v775_v47 = vld [vmem:[%s2518_s4 + $0x38] sm:$0xff] }
 0x18b   :  { %v595_v30 = vmax.f32 %v516_v24, 0.0  ;;  %v1647_v24 = vpack.c.bf16 %v775_v47, %v771_v23  ;;  %v982_v23 = vld [vmem:[%s2519_s6 + $0x50] sm:$0xff]  ;;  %v983_v47 = vld [vmem:[%s2519_s6 + $0x58] sm:$0xff] }
 0x18c   :  { %v520_v31 = vpop.f32.mrb[84].mxu0 }
 0x18d   :  { %v1620_v32 = vpack.c.bf16 %v595_v30, %v594_v28  ;;  %v1547_v33 = vpop.f32.mrb[85].mxu0  ;;  %v521_v34 = vadd.f32 %v2103_v61, %v520_v31  ;;  %v770_v31 = vld [vmem:[%s2518_s4 + $0x10] sm:$0xff] }
 0x18e   :  { %v779_v33 = vld [vmem:[%s2518_s4 + $0x58] sm:$0xff] }
 0x18f   :  { %1621 = vmatpush1.bf16.msra.mxu1 %v1620_v32  ;;  %v596_v37 = vmax.f32 %v521_v34, 0.0  ;;  %v774_v32 = vld [vmem:[%s2518_s4 + $0x30] sm:$0xff]  ;;  %v783_v34 = vld [vmem:[%s2518_s4 + $0x78] sm:$0xff] }
 0x190   :  { %v525_v56 = vpop.f32.mrb[86].mxu0  ;;  %1622 = vmatprep.subr.bf16.mxu1 %v1732_v0 }
 0x191   :  { %v526_v35 = vadd.f32 %v2103_v61, %v525_v56  ;;  %v1550_v36 = vpop.f32.mrb[87].mxu0 }
 0x193   :  { %v597_v39 = vmax.f32 %v526_v35, 0.0  ;;  %v1649_v35 = vpack.c.bf16 %v774_v32, %v770_v31  ;;  %v984_v31 = vld [vmem:[%s2519_s6 + $0x60] sm:$0xff]  ;;  %v985_v32 = vld [vmem:[%s2519_s6 + $0x68] sm:$0xff] }
 0x194   :  { %v530_v40 = vpop.f32.mrb[88].mxu0 }
 0x195   :  { %v1623_v41 = vpack.c.bf16 %v597_v39, %v596_v37  ;;  %v1553_v42 = vpop.f32.mrb[89].mxu0  ;;  %v531_v43 = vadd.f32 %v2103_v61, %v530_v40  ;;  %v1651_v39 = vpack.c.bf16 %v783_v34, %v779_v33  ;;  %v778_v40 = vld [vmem:[%s2518_s4 + $0x50] sm:$0xff]  ;;  %v1689_v33 = vpack.c.bf16 %v985_v32, %v984_v31 }
 0x196   :  { %v787_v42 = vld [vmem:[%s2518_s4 + $0x98] sm:$0xff]  ;;  %v1002_v34 = vld [vmem:[%s2519_s6 + $0xf0] sm:$0xff]  ;;  %v812_v32 = vsub.s32 2, %v2105_v6 }
 0x197   :  { %1624 = vmatpush1.bf16.msra.mxu1 %v1623_v41  ;;  %v598_v46 = vmax.f32 %v531_v43, 0.0  ;;  %v782_v41 = vld [vmem:[%s2518_s4 + $0x70] sm:$0xff]  ;;  %v791_v43 = vld [vmem:[%s2518_s4 + $0xb8] sm:$0xff] }
 0x198   :  { %v535_v3 = vpop.f32.mrb[90].mxu0  ;;  %1625 = vmatprep.subr.bf16.mxu1 %v1732_v0 }
 0x199   :  { %v536_v44 = vadd.f32 %v2103_v61, %v535_v3  ;;  %v1556_v45 = vpop.f32.mrb[91].mxu0  ;;  %v1653_v3 = vpack.c.bf16 %v782_v41, %v778_v40  ;;  %v1020_v40 = vld [vmem:[%s2519_s6 + $0x180] sm:$0xff]  ;;  %v1021_v41 = vld [vmem:[%s2519_s6 + $0x188] sm:$0xff] }
 0x19a   :  { %v786_v45 = vld [vmem:[%s2518_s4 + $0x90] sm:$0xff] }
 0x19b   :  { %v599_v48 = vmax.f32 %v536_v44, 0.0  ;;  %v1655_v44 = vpack.c.bf16 %v791_v43, %v787_v42  ;;  %v1695_v42 = vpack.c.bf16 %v1021_v41, %v1020_v40  ;;  %v804_v43 = vsub.s32 0, %v2105_v6  ;;  %v1018_v40 = vld [vmem:[%s2519_s6 + $0x170] sm:$0xff]  ;;  %v1019_v41 = vld [vmem:[%s2519_s6 + $0x178] sm:$0xff] }
 0x19c   :  { %v540_v49 = vpop.f32.mrb[92].mxu0 }
 0x19d   :  { %v1626_v50 = vpack.c.bf16 %v599_v48, %v598_v46  ;;  %v1559_v15 = vpop.f32.mrb[93].mxu0  ;;  %v541_v51 = vadd.f32 %v2103_v61, %v540_v49  ;;  %v790_v46 = vld [vmem:[%s2518_s4 + $0xb0] sm:$0xff]  ;;  %v795_v48 = vld [vmem:[%s2518_s4 + $0xd8] sm:$0xff] }
 0x19e   :  { %v799_v49 = vld [vmem:[%s2518_s4 + $0xf8] sm:$0xff]  ;;  %v794_v15 = vld [vmem:[%s2518_s4 + $0xd0] sm:$0xff] }
 0x19f   :  { %1627 = vmatpush1.bf16.msra.mxu1 %v1626_v50  ;;  %v600_v19 = vmax.f32 %v541_v51, 0.0  ;;  %v1659_v50 = vpack.c.bf16 %v799_v49, %v795_v48  ;;  %v798_v51 = vld [vmem:[%s2518_s4 + $0xf0] sm:$0xff] }
 0x1a0   :  { %v545_v52 = vpop.f32.mrb[94].mxu0  ;;  %1628 = vmatprep.subr.bf16.mxu1 %v1732_v0  ;;  %v769_v0 = vld [vmem:[%s2518_s4 + $0x8] sm:$0xff] }
 0x1a1   :  { %v546_v53 = vadd.f32 %v2103_v61, %v545_v52  ;;  %v1562_v54 = vpop.f32.mrb[95].mxu0  ;;  %v1631_v63 = vpack.c.bf16 %v773_v62, %v769_v0  ;;  %v988_v52 = vld [vmem:[%s2519_s6 + $0x80] sm:$0xff]  ;;  %v974_v0 = vld [vmem:[%s2519_s6 + $0x10] sm:$0xff]  ;;  %v975_v62 = vld [vmem:[%s2519_s6 + $0x18] sm:$0xff] }
 0x1a2   :  { %v1661_v54 = vpack.c.bf16 %v798_v51, %v794_v15  ;;  %v1005_v15 = vld [vmem:[%s2519_s6 + $0x108] sm:$0xff] }
 0x1a3   :  { %v601_v55 = vmax.f32 %v546_v53, 0.0  ;;  %v989_v53 = vld [vmem:[%s2519_s6 + $0x88] sm:$0xff] }
 0x1a4   :  { %v550_v26 = vpop.f32.mrb[96].mxu0 }
 0x1a5   :  { %v1629_v57 = vpack.c.bf16 %v601_v55, %v600_v19  ;;  %v551_v58 = vadd.f32 %v2103_v61, %v550_v26  ;;  %v1565_v59 = vpop.f32.mrb[97].mxu0  ;;  %v768_v61 = vld [vmem:[%s2518_s4] sm:$0xff]  ;;  %v1663_v19 = vpack.c.bf16 %v989_v53, %v988_v52  ;;  %v973_v26 = vld [vmem:[%s2519_s6 + $0x8] sm:$0xff]  ;;  %v1022_v52 = vld [vmem:[%s2519_s6 + $0x190] sm:$0xff] }
 0x1a6   :  { %v1633_v29 = vpack.c.bf16 %v772_v1, %v768_v61  ;;  %v972_v55 = vld [vmem:[%s2519_s6] sm:$0xff]  ;;  %v1669_v1 = vpack.c.bf16 %v975_v62, %v974_v0  ;;  %v1023_v53 = vld [vmem:[%s2519_s6 + $0x198] sm:$0xff] }
 0x1a7   :  { %v602_v60 = vmax.f32 %v551_v58, 0.0  ;;  %1630 = vmatpush1.bf16.msra.mxu1 %v1629_v57  ;;  %v990_v57 = vld [vmem:[%s2519_s6 + $0x90] sm:$0xff]  ;;  %v991_v58 = vld [vmem:[%s2519_s6 + $0x98] sm:$0xff]  ;;  %v1665_v59 = vpack.c.bf16 %v973_v26, %v972_v55  ;;  %v992_v61 = vld [vmem:[%s2519_s6 + $0xa0] sm:$0xff]  ;;  %v1699_v26 = vpack.c.bf16 %v1023_v53, %v1022_v52 }
 0x1a8   :  { %730 = vmatprep.subr.mxu1 %v1734_v4 }
 0x1ab   :  { %731 = vmatpush1.msra.mxu1 %v602_v60  ;;  %v1667_v60 = vpack.c.bf16 %v991_v58, %v990_v57  ;;  %v1006_v57 = vld [vmem:[%s2519_s6 + $0x110] sm:$0xff]  ;;  %v1007_v58 = vld [vmem:[%s2519_s6 + $0x118] sm:$0xff] }
 0x1ac   :  { %763 = vmatmul.mubr.f32.vlgmr.msra.gmra.mrb[2].mxu1 %v2121_v25  ;;  %v777_v25 = vld [vmem:[%s2518_s4 + $0x48] sm:$0xff]  ;;  %1632 = vmatprep.subr.bf16.mxu1 %v1631_v63  ;;  %v1701_v0 = vpack.c.bf16 %v1007_v58, %v1006_v57 }
 0x1ad   :  { %890 = vmatprep.mubr.f32.mxu1 %v1734_v4  ;;  %v1635_v2 = vpack.c.bf16 %v781_v13, %v777_v25  ;;  %1634 = vmatpush1.bf16.msra.mxu1 %v1633_v29  ;;  %v993_v63 = vld [vmem:[%s2519_s6 + $0xa8] sm:$0xff]  ;;  %v976_v13 = vld [vmem:[%s2519_s6 + $0x20] sm:$0xff] }
 0x1ae   :  { %v1671_v25 = vpack.c.bf16 %v993_v63, %v992_v61  ;;  %v977_v29 = vld [vmem:[%s2519_s6 + $0x28] sm:$0xff]  ;;  %v1008_v61 = vld [vmem:[%s2519_s6 + $0x120] sm:$0xff] }
 0x1af   :  { %1636 = vmatprep.subr.bf16.mxu1 %v1635_v2  ;;  %v994_v2 = vld [vmem:[%s2519_s6 + $0xb0] sm:$0xff]  ;;  %v1673_v7 = vpack.c.bf16 %v977_v29, %v976_v13  ;;  %v1009_v63 = vld [vmem:[%s2519_s6 + $0x128] sm:$0xff]  ;;  %v1027_v13 = vld [vmem:[%s2519_s6 + $0x1b8] sm:$0xff] }
 0x1b0   :  { %v1675_v8 = vpack.c.bf16 %v995_v5, %v994_v2  ;;  %v1705_v29 = vpack.c.bf16 %v1009_v63, %v1008_v61  ;;  %v1010_v5 = vld [vmem:[%s2519_s6 + $0x130] sm:$0xff] }
 0x1b1   :  { %1638 = vmatpush1.bf16.msra.mxu1 %v1637_v10  ;;  %v979_v10 = vld [vmem:[%s2519_s6 + $0x38] sm:$0xff] }
 0x1b2   :  { %1640 = vmatprep.subr.bf16.mxu1 %v1639_v11  ;;  %v996_v11 = vld [vmem:[%s2519_s6 + $0xc0] sm:$0xff]  ;;  %v1677_v38 = vpack.c.bf16 %v979_v10, %v978_v9  ;;  %v1029_v10 = vld [vmem:[%s2519_s6 + $0x1c8] sm:$0xff] }
 0x1b3   :  { %v1679_v14 = vpack.c.bf16 %v997_v12, %v996_v11  ;;  %v1028_v9 = vld [vmem:[%s2519_s6 + $0x1c0] sm:$0xff] }
 0x1b5   :  { %1642 = vmatpush1.bf16.msra.mxu1 %v1641_v17  ;;  %v981_v17 = vld [vmem:[%s2519_s6 + $0x48] sm:$0xff] }
 0x1b6   :  { %1644 = vmatprep.subr.bf16.mxu1 %v1643_v18  ;;  %v998_v18 = vld [vmem:[%s2519_s6 + $0xd0] sm:$0xff]  ;;  %v1681_v21 = vpack.c.bf16 %v981_v17, %v980_v16  ;;  %v1012_v16 = vld [vmem:[%s2519_s6 + $0x140] sm:$0xff]  ;;  %v1013_v17 = vld [vmem:[%s2519_s6 + $0x148] sm:$0xff] }
 0x1b9   :  { %1646 = vmatpush1.bf16.msra.mxu1 %v1645_v22  ;;  %v1683_v22 = vpack.c.bf16 %v999_v20, %v998_v18  ;;  %v1030_v20 = vld [vmem:[%s2519_s6 + $0x1d0] sm:$0xff] }
 0x1ba   :  { %1648 = vmatprep.subr.bf16.mxu1 %v1647_v24  ;;  %v1000_v24 = vld [vmem:[%s2519_s6 + $0xe0] sm:$0xff] }
 0x23e   :  { %v1332_v27 = vpop.f32.mrb[0].mxu1 }
 0x23f   :  { %v1333_v28 = vpop.f32.mrb[1].mxu1 }
 0x240   :  { %v1334_v30 = vadd.f32 %v1333_v28, %v1332_v27  ;;  %v1001_v27 = vld [vmem:[%s2519_s6 + $0xe8] sm:$0xff]  ;;  %v1685_v28 = vpack.c.bf16 %v983_v47, %v982_v23  ;;  %v1713_v23 = vpack.c.bf16 %v1013_v17, %v1012_v16 }
 0x27f   :  { %v764_v56 = vpop.f32.mrb[2].mxu1 }
 0x280   :  { %v765_v36 = vadd.f32 %v1334_v30, %v764_v56  ;;  %v766_v37 = vpop.f32.mrb[3].mxu1  ;;  %v1687_v30 = vpack.c.bf16 %v1001_v27, %v1000_v24  ;;  %v1003_v56 = vld [vmem:[%s2519_s6 + $0xf8] sm:$0xff]  ;;  %v1014_v24 = vld [vmem:[%s2519_s6 + $0x150] sm:$0xff] }
 0x281   :  { %v987_v37 = vld [vmem:[%s2519_s6 + $0x78] sm:$0xff] }
 0x282   :  { %1241 = vmatmul.mubr.msk.f32.vlgmr.msra.gmra.mrb[4].mxu1 %vm822_vm4, %v765_v36  ;;  %v1015_v27 = vld [vmem:[%s2519_s6 + $0x158] sm:$0xff] }
 0x283   :  { %1650 = vmatpush1.bf16.msra.mxu1 %v1649_v35  ;;  %961 = vmatprep.mubr.f32.mxu1 %v1734_v4  ;;  %v1657_v4 = vpack.c.bf16 %v790_v46, %v786_v45  ;;  %v1691_v35 = vpack.c.bf16 %v1003_v56, %v1002_v34  ;;  %v1717_v31 = vpack.c.bf16 %v1015_v27, %v1014_v24  ;;  %v1016_v34 = vld [vmem:[%s2519_s6 + $0x160] sm:$0xff]  ;;  %v1017_v56 = vld [vmem:[%s2519_s6 + $0x168] sm:$0xff] }
 0x284   :  { %1652 = vmatprep.subr.bf16.mxu1 %v1651_v39 }
 0x287   :  { %1654 = vmatpush1.bf16.msra.mxu1 %v1653_v3  ;;  %v2409_v3 = vld [vmem:[%s2520_s5] sm:$0xf] }
 0x288   :  { %1656 = vmatprep.subr.bf16.mxu1 %v1655_v44  ;;  %v808_v44 = vsub.s32 1, %v2105_v6  ;;  %v805_v45 = vrot.slane %v2409_v3, %v804_v43 }
 0x28a   :  { %v809_v46 = vrot.slane %v2409_v3, %v808_v44 }
 0x28b   :  { %1658 = vmatpush1.bf16.msra.mxu1 %v1657_v4 }
 0x28c   :  { %1660 = vmatprep.subr.bf16.mxu1 %v1659_v50  ;;  %v1004_v50 = vld [vmem:[%s2519_s6 + $0x100] sm:$0xff] }
 0x28f   :  { %1662 = vmatpush1.bf16.msra.mxu1 %v1661_v54 }
 0x290   :  { %1664 = vmatprep.subr.bf16.mxu1 %v1663_v19  ;;  %v1697_v19 = vpack.c.bf16 %v1005_v15, %v1004_v50 }
 0x292   :  { %1242 = vmatmul.mubr.msk.f32.vlgmr.msra.gmra.mrb[6].mxu1 %vm822_vm4, %v765_v36  ;;  %v986_v36 = vld [vmem:[%s2519_s6 + $0x70] sm:$0xff] }
 0x293   :  { %1666 = vmatpush3.bf16.msra.mxu1 %v1665_v59  ;;  %v1693_v39 = vpack.c.bf16 %v987_v37, %v986_v36  ;;  %v1024_v59 = vld [vmem:[%s2519_s6 + $0x1a0] sm:$0xff]  ;;  %v1035_v36 = vld [vmem:[%s2519_s6 + $0x1f8] sm:$0xff]  ;;  %v813_v37 = vrot.slane %v2409_v3, %v812_v32 }
 0x294   :  { %1668 = vmatprep.subr.bf16.mxu1 %v1667_v60  ;;  %v1025_v60 = vld [vmem:[%s2519_s6 + $0x1a8] sm:$0xff] }
 0x295   :  { %v1703_v62 = vpack.c.bf16 %v1025_v60, %v1024_v59 }
 0x297   :  { %1670 = vmatpush3.bf16.msra.mxu1 %v1669_v1  ;;  %v816_v1 = vsub.s32 3, %v2105_v6  ;;  %v1721_v6 = vpack.c.bf16 %v1017_v56, %v1016_v34 }
 0x298   :  { %1672 = vmatprep.subr.bf16.mxu1 %v1671_v25  ;;  %v1026_v25 = vld [vmem:[%s2519_s6 + $0x1b0] sm:$0xff] }
 0x299   :  { %v1707_v2 = vpack.c.bf16 %v1027_v13, %v1026_v25 }
 0x29b   :  { %1674 = vmatpush3.bf16.msra.mxu1 %v1673_v7  ;;  %v1011_v7 = vld [vmem:[%s2519_s6 + $0x138] sm:$0xff] }
 0x29c   :  { %1676 = vmatprep.subr.bf16.mxu1 %v1675_v8  ;;  %v817_v8 = vrot.slane %v2409_v3, %v816_v1  ;;  %v1709_v12 = vpack.c.bf16 %v1011_v7, %v1010_v5 }
 0x29f   :  { %1678 = vmatpush3.bf16.msra.mxu1 %v1677_v38 }
 0x2a0   :  { %1680 = vmatprep.subr.bf16.mxu1 %v1679_v14  ;;  %v1711_v14 = vpack.c.bf16 %v1029_v10, %v1028_v9 }
 0x2a3   :  { %1682 = vmatpush3.bf16.msra.mxu1 %v1681_v21  ;;  %v1031_v21 = vld [vmem:[%s2519_s6 + $0x1d8] sm:$0xff] }
 0x2a4   :  { %1684 = vmatprep.subr.bf16.mxu1 %v1683_v22  ;;  %v1715_v47 = vpack.c.bf16 %v1031_v21, %v1030_v20 }
 0x2a7   :  { %1686 = vmatpush3.bf16.msra.mxu1 %v1685_v28  ;;  %v1032_v28 = vld [vmem:[%s2519_s6 + $0x1e0] sm:$0xff] }
 0x2a8   :  { %1688 = vmatprep.subr.bf16.mxu1 %v1687_v30  ;;  %v1033_v30 = vld [vmem:[%s2519_s6 + $0x1e8] sm:$0xff] }
 0x2ab   :  { %1690 = vmatpush3.bf16.msra.mxu1 %v1689_v33  ;;  %v1719_v33 = vpack.c.bf16 %v1033_v30, %v1032_v28 }
 0x2ac   :  { %1692 = vmatprep.subr.bf16.mxu1 %v1691_v35  ;;  %v1034_v35 = vld [vmem:[%s2519_s6 + $0x1f0] sm:$0xff] }
 0x2af   :  { %1694 = vmatpush3.bf16.msra.mxu1 %v1693_v39  ;;  %v1723_v39 = vpack.c.bf16 %v1035_v36, %v1034_v35 }
 0x2b0   :  { %1696 = vmatprep.subr.bf16.mxu1 %v1695_v42  ;;  %v1725_v42 = vpack.c.bf16 %v1019_v41, %v1018_v40 }
 0x355   :  { %v892_v48 = vpop.f32.mrb[4].mxu1 }
 0x356   :  { %v893_v49 = vadd.f32 %v892_v48, %v805_v45  ;;  %v894_v4 = vpop.f32.mrb[5].mxu1  ;;  %v1243_v48 = vld [vmem:[%s2521_s7] ss:$0 sm:$0xff] }
 0x357   :  { %v895_v51 = vadd.f32 %v894_v4, %v809_v46 }
 0x358   :  { %v968_v55 = vmax.f32 %v893_v49, 0.0 }
 0x359   :  { %v969_v54 = vmax.f32 %v895_v51, 0.0 }
 0x35b   :  { %1107 = vmatprep.mubr.f32.mxu1 %v969_v54 }
 0x35c   :  { %1108 = vmatmul.mubr.f32.vlgmr.msra.gmra.mrb[8].mxu1 %v968_v55 }
 0x35d   :  { %1698 = vmatpush3.bf16.msra.mxu1 %v1697_v19 }
 0x35e   :  { %1700 = vmatprep.subr.bf16.mxu1 %v1699_v26 }
 0x361   :  { %1702 = vmatpush3.bf16.msra.mxu1 %v1701_v0 }
 0x362   :  { %1704 = vmatprep.subr.bf16.mxu1 %v1703_v62 }
 0x365   :  { %v963_v11 = vpop.f32.mrb[6].mxu1  ;;  %1706 = vmatpush3.bf16.msra.mxu1 %v1705_v29 }
 0x366   :  { %v965_v38 = vpop.f32.mrb[7].mxu1  ;;  %1708 = vmatprep.subr.bf16.mxu1 %v1707_v2  ;;  %v964_v43 = vadd.f32 %v963_v11, %v813_v37 }
 0x367   :  { %v966_v18 = vadd.f32 %v965_v38, %v817_v8 }
 0x368   :  { %v970_v44 = vmax.f32 %v964_v43, 0.0 }
 0x369   :  { %v971_v22 = vmax.f32 %v966_v18, 0.0  ;;  %1710 = vmatpush3.bf16.msra.mxu1 %v1709_v12 }
 0x36a   :  { %1712 = vmatprep.subr.bf16.mxu1 %v1711_v14 }
 0x36b   :  { %1177 = vmatprep.mubr.f32.mxu1 %v971_v22 }
 0x36d   :  { %1714 = vmatpush3.bf16.msra.mxu1 %v1713_v23 }
 0x36e   :  { %1716 = vmatprep.subr.bf16.mxu1 %v1715_v47 }
 0x371   :  { %1718 = vmatpush3.bf16.msra.mxu1 %v1717_v31 }
 0x372   :  { %1720 = vmatprep.subr.bf16.mxu1 %v1719_v33 }
 0x375   :  { %1722 = vmatpush3.bf16.msra.mxu1 %v1721_v6 }
 0x376   :  { %1724 = vmatprep.subr.bf16.mxu1 %v1723_v39 }
 0x379   :  { %1726 = vmatpush3.bf16.msra.mxu1 %v1725_v42 }
 0x37c   :  { %1178 = vmatmul.mubr.f32.vlgmr.msra.gmra.mrb[10].mxu1 %v970_v44 }
 0x42f   :  { %v1367_v45 = vpop.f32.mrb[8].mxu1 }
 0x430   :  { %v1368_v46 = vpop.f32.mrb[9].mxu1 }
 0x431   :  { %v1369_v3 = vadd.f32 %v1368_v46, %v1367_v45 }
 0x433   :  { %v1110_v50 = vadd.f32 %v1369_v3, %v1243_v48 }
 0x44f   :  { %v1402_v49 = vpop.f32.mrb[10].mxu1 }
 0x450   :  { %v1403_v4 = vpop.f32.mrb[11].mxu1 }
 0x451   :  { %v1404_v15 = vadd.f32 %v1403_v4, %v1402_v49 }
 0x453   :  { %v1180_v51 = vadd.f32 %v1404_v15, %v1110_v50 }
 0x455   :  { %1184 = vst.msk [vmem:[%s2522_s8] sm:$0x3] %vm1183_vm5, %v1180_v51 }

</bundles_post_ra>
